<compile_context>
chip_gen: v5e
topology: v5e:2x2
jax: 0.10.0
libtpu: 0.0.40
codegen_flags: <defaults>
</compile_context>

<pallas_src>
import functools

import jax
import jax.numpy as jnp
from jax import lax
from jax.experimental import pallas as pl
from jax.experimental.pallas import tpu as pltpu

TRIPLET_MARGIN = 0.3   # deterministic "configer" hyper-parameter
LIFTED_MARGIN = 1.0    # deterministic "configer" hyper-parameter
_EPS = 1e-12
_PAD_LOGIT = -1e9      # class-pad fill: never the row max, exp() underflows to 0

# loss-type codes (mirror torchcv Loss.func_list ordering)
_CE, _KL, _TRIPLET, _LIFTED, _SOFT_CE, _MIXUP_CE, _MIXUP_SOFT_CE = range(7)
_CE_FAMILY = (_CE, _KL, _SOFT_CE, _MIXUP_CE, _MIXUP_SOFT_CE)
_CE_LANE = {_CE: 0, _KL: 1, _SOFT_CE: 2, _MIXUP_CE: 3, _MIXUP_SOFT_CE: 4}


# ----------------------------------------------------------------------------
# Per-generation VMEM budgeting
# ----------------------------------------------------------------------------
def _vmem_limit_bytes():
    """Scoped-VMEM request derived from the physical capacity of the running
    generation: ~3/4 of physical, capped at 64 MiB.
    v5e/v6e (128 MiB physical) -> 64 MiB, v7x (64 MiB physical) -> 48 MiB."""
    cap = 128 << 20
    try:
        info = pltpu.get_tpu_info()
        cap = int(getattr(info, "vmem_capacity_bytes", cap))
    except Exception:
        pass
    return max(16 << 20, min(cap * 3 // 4, 64 << 20))


def _round_up(x, m):
    return ((x + m - 1) // m) * m


def _pick_batch_tile(b, c_pad, n_streams, budget_bytes):
    """Largest multiple-of-8 batch tile such that the double-buffered bf16
    (TB, C_pad) input streams fit the per-generation VMEM budget (capped at
    1024 rows -- past ~512 rows the tiling curve is flat)."""
    per_row = n_streams * 2 * c_pad * 2          # streams x double-buffer x bf16
    tb = (budget_bytes // max(per_row, 1)) // 8 * 8
    tb = max(8, min(tb, 1024))
    return b if tb >= b else tb


# ----------------------------------------------------------------------------
# Statically specialized CE-family kernel (CE / KL / SoftCE / MixupCE / MixupSoftCE)
# ----------------------------------------------------------------------------
def _ce_family_kernel(*refs, batch_size, tiles_per_split, lam_ce, lam_soft,
                      has_lab_a, has_lab_b, has_tgt_a, has_tgt_b,
                      want_ce, want_kl, want_sce, want_mix_ce, want_mix_sce):
    """One (TB, C_pad) batch tile: log_softmax computed once, only the requested
    losses are evaluated, one cross-sublane reduce into the (1, 128) acc."""
    it = iter(refs)
    logits_ref = next(it)
    lab_a_ref = next(it) if has_lab_a else None
    lab_b_ref = next(it) if has_lab_b else None
    tgt_a_ref = next(it) if has_tgt_a else None
    tgt_b_ref = next(it) if has_tgt_b else None
    out_ref = next(it)
    acc_ref = next(it)

    s = pl.program_id(0)          # split (TensorCore) index
    i = pl.program_id(1)          # tile index within the split

    @pl.when(i == 0)
    def _init():
        acc_ref[...] = jnp.zeros_like(acc_ref)

    x = logits_ref[...].astype(jnp.float32)                      # (TB, Cp)
    tb_rows, cp = x.shape

    # rows past the true batch (ragged / clamped tiles) contribute nothing
    row = (s * tiles_per_split + i) * tb_rows + lax.broadcasted_iota(
        jnp.int32, (tb_rows, 1), 0)
    valid_rows = row < batch_size                                 # (TB, 1)

    # ---- shared log-softmax (padded class lanes hold _PAD_LOGIT -> no effect)
    m = jnp.max(x, axis=-1, keepdims=True)
    z = x - m
    lse = jnp.log(jnp.sum(jnp.exp(z), axis=-1, keepdims=True))
    logp = z - lse                                                # (TB, Cp)

    parts = []                                                    # (lane, (TB,1))

    nll_a = nll_b = None
    if want_ce or want_mix_ce:
        cls = lax.broadcasted_iota(jnp.int32, (tb_rows, cp), 1)
        lab_a = lab_a_ref[...]
        nll_a = -jnp.sum(jnp.where(cls == lab_a, logp, 0.0),
                         axis=-1, keepdims=True)
        if want_mix_ce:
            lab_b = lab_b_ref[...]
            nll_b = -jnp.sum(jnp.where(cls == lab_b, logp, 0.0),
                             axis=-1, keepdims=True)

    sce_a = sce_b = None
    if want_kl or want_sce or want_mix_sce:
        ta = tgt_a_ref[...].astype(jnp.float32)
        sce_a = -jnp.sum(ta * logp, axis=-1, keepdims=True)
    if want_mix_sce:
        tb_t = tgt_b_ref[...].astype(jnp.float32)
        sce_b = -jnp.sum(tb_t * logp, axis=-1, keepdims=True)

    if want_ce:
        parts.append((_CE_LANE[_CE], nll_a))
    if want_kl:
        # KL(t || softmax(x)) = sum t*log(t) + SoftCE  -> reuse sce_a row term
        ent = jnp.sum(ta * jnp.log(ta + _EPS), axis=-1, keepdims=True)
        parts.append((_CE_LANE[_KL], ent + sce_a))
    if want_sce:
        parts.append((_CE_LANE[_SOFT_CE], sce_a))
    if want_mix_ce:
        parts.append((_CE_LANE[_MIXUP_CE],
                      lam_ce * nll_a + (1.0 - lam_ce) * nll_b))
    if want_mix_sce:
        parts.append((_CE_LANE[_MIXUP_SOFT_CE],
                      lam_soft * sce_a + (1.0 - lam_soft) * sce_b))

    # single lane-dense staging slab -> one cross-sublane reduce per tile
    lane = lax.broadcasted_iota(jnp.int32, (1, 128), 1)
    slab = jnp.zeros((tb_rows, 128), jnp.float32)
    for lane_idx, col in parts:
        slab = slab + jnp.where(lane == lane_idx, col, 0.0)
    slab = jnp.where(valid_rows, slab, 0.0)      # `where`: padded-row NaN safe
    acc_ref[...] += jnp.sum(slab, axis=0, keepdims=True)

    @pl.when(i == tiles_per_split - 1)
    def _finalize():
        out_ref[...] = jnp.broadcast_to(
            acc_ref[...] * (1.0 / batch_size), (1, 8, 128))


def _ce_family_losses(logits, labels_a, labels_b, tgt_a, tgt_b,
                      lam_ce, lam_soft, losses, tile_rows=None):
    """Single specialized pallas_call.  Returns a (128,) lane vector:
    lane 0 = CE, 1 = KL, 2 = SoftCE, 3 = MixupCE, 4 = MixupSoftCE; only the
    lanes of the requested `losses` are populated and only the required input
    streams are DMA'd (bf16 in HBM, f32 in vregs)."""
    want_ce = _CE in losses
    want_kl = _KL in losses
    want_sce = _SOFT_CE in losses
    want_mix_ce = _MIXUP_CE in losses
    want_mix_sce = _MIXUP_SOFT_CE in losses
    has_lab_a = want_ce or want_mix_ce
    has_lab_b = want_mix_ce
    has_tgt_a = want_kl or want_sce or want_mix_sce
    has_tgt_b = want_mix_sce

    logits = jnp.asarray(logits)
    b, c = logits.shape
    c_pad = _round_up(c, 128)

    def _prep_logits(x):
        x = x.astype(jnp.bfloat16)
        if c_pad != c:
            x = jnp.pad(x, ((0, 0), (0, c_pad - c)), constant_values=_PAD_LOGIT)
        return x

    def _prep_tgt(t):
        if t is None:
            raise ValueError("soft target required for the requested loss")
        t = jnp.asarray(t).astype(jnp.bfloat16)
        if c_pad != c:
            t = jnp.pad(t, ((0, 0), (0, c_pad - c)))
        return t

    def _prep_lab(l):
        if l is None:
            raise ValueError("integer labels required for the requested loss")
        return jnp.asarray(l).astype(jnp.int32).reshape(b, 1)

    n_streams = 1 + int(has_tgt_a) + int(has_tgt_b)
    vlim = _vmem_limit_bytes()
    if tile_rows is None:
        tb = _pick_batch_tile(b, c_pad, n_streams, vlim - (6 << 20))
    else:
        tb = tile_rows
    n_tiles = pl.cdiv(b, tb)
    n_splits = 2 if n_tiles >= 2 else 1          # both TensorCores on v7x
    inner = pl.cdiv(n_tiles, n_splits)

    def blk(shape):
        # clamp so the last (possibly dead) tile of the last split stays in
        # bounds; its rows are masked out inside the kernel.
        return pl.BlockSpec(
            shape, lambda s, i: (jnp.minimum(s * inner + i, n_tiles - 1), 0))

    operands = [_prep_logits(logits)]
    in_specs = [blk((tb, c_pad))]
    if has_lab_a:
        operands.append(_prep_lab(labels_a)); in_specs.append(blk((tb, 1)))
    if has_lab_b:
        operands.append(_prep_lab(labels_b)); in_specs.append(blk((tb, 1)))
    if has_tgt_a:
        operands.append(_prep_tgt(tgt_a)); in_specs.append(blk((tb, c_pad)))
    if has_tgt_b:
        operands.append(_prep_tgt(tgt_b)); in_specs.append(blk((tb, c_pad)))

    kernel = functools.partial(
        _ce_family_kernel, batch_size=b, tiles_per_split=inner,
        lam_ce=float(lam_ce) if want_mix_ce else 0.0,
        lam_soft=float(lam_soft) if want_mix_sce else 0.0,
        has_lab_a=has_lab_a, has_lab_b=has_lab_b,
        has_tgt_a=has_tgt_a, has_tgt_b=has_tgt_b,
        want_ce=want_ce, want_kl=want_kl, want_sce=want_sce,
        want_mix_ce=want_mix_ce, want_mix_sce=want_mix_sce)

    out = pl.pallas_call(
        kernel,
        out_shape=jax.ShapeDtypeStruct((n_splits, 8, 128), jnp.float32),
        grid=(n_splits, inner),
        in_specs=in_specs,
        out_specs=pl.BlockSpec((1, 8, 128), lambda s, i: (s, 0, 0)),
        scratch_shapes=[pltpu.VMEM((1, 128), jnp.float32)],
        compiler_params=pltpu.CompilerParams(
            dimension_semantics=("parallel", "arbitrary"),
            vmem_limit_bytes=vlim),
    )(*operands)
    return jnp.sum(out[:, 0, :], axis=0)          # (128,) lane vector


# ----------------------------------------------------------------------------
# Tiled metric-learning kernels (HardTriplet + LiftedStructure)
# ----------------------------------------------------------------------------
def _pairwise_tile_dist(xq, xk):
    """(TQ, D) x (TK, D) bf16 -> (TQ, TK) f32 distances. Gram on the MXU with
    f32 accumulation; squared norms in f32."""
    g = lax.dot_general(xq, xk, (((1,), (1,)), ((), ())),
                        preferred_element_type=jnp.float32)
    xqf = xq.astype(jnp.float32)
    xkf = xk.astype(jnp.float32)
    sq_q = jnp.sum(xqf * xqf, axis=-1, keepdims=True)            # (TQ, 1)
    sq_k = jnp.sum(xkf * xkf, axis=-1, keepdims=True)            # (TK, 1)
    d2 = sq_q + jnp.transpose(sq_k) - 2.0 * g
    return jnp.sqrt(jnp.maximum(d2, 0.0) + _EPS)


def _metric_stats_kernel(fq_ref, fk_ref, lq_ref, lk_ref, stats_ref,
                         dp_sc, dn_sc, rn_sc, *, batch,
                         want_triplet, want_lifted):
    """Pass 1: per-anchor hardest-positive / hardest-negative distance and
    sum_j(neg) exp(margin - d) reduced over key tiles.  Diagonal is excluded
    from positives; anchors with no positive keep dp = -inf (skipped later)."""
    qi = pl.program_id(0)
    ki = pl.program_id(1)

    @pl.when(ki == 0)
    def _init():
        dp_sc[...] = jnp.full(dp_sc.shape, -jnp.inf, dp_sc.dtype)
        dn_sc[...] = jnp.full(dn_sc.shape, jnp.inf, dn_sc.dtype)
        rn_sc[...] = jnp.zeros(rn_sc.shape, rn_sc.dtype)

    tq = fq_ref.shape[0]
    tk = fk_ref.shape[0]
    d = _pairwise_tile_dist(fq_ref[...], fk_ref[...])             # (TQ, TK)

    same = lq_ref[...] == jnp.transpose(lk_ref[...])
    qrow = qi * tq + lax.broadcasted_iota(jnp.int32, (tq, 1), 0)
    krow = ki * tk + lax.broadcasted_iota(jnp.int32, (1, tk), 1)
    key_valid = krow < batch
    pos = jnp.logical_and(jnp.logical_and(same, qrow != krow), key_valid)
    neg = jnp.logical_and(jnp.logical_not(same), key_valid)

    if want_triplet:
        dp_sc[...] = jnp.maximum(
            dp_sc[...],
            jnp.max(jnp.where(pos, d, -jnp.inf), axis=-1, keepdims=True))
        dn_sc[...] = jnp.minimum(
            dn_sc[...],
            jnp.min(jnp.where(neg, d, jnp.inf), axis=-1, keepdims=True))
    if want_lifted:
        rn_sc[...] += jnp.sum(jnp.where(neg, jnp.exp(LIFTED_MARGIN - d), 0.0),
                              axis=-1, keepdims=True)

    @pl.when(ki == pl.num_programs(1) - 1)
    def _finalize():
        lane = lax.broadcasted_iota(jnp.int32, (1, 128), 1)
        stats_ref[...] = (jnp.where(lane == 0, dp_sc[...], 0.0)
                          + jnp.where(lane == 1, dn_sc[...], 0.0)
                          + jnp.where(lane == 2, rn_sc[...], 0.0))


def _metric_lifted_kernel(fq_ref, fk_ref, lq_ref, lk_ref, sq_ref, sk_ref,
                          out_ref, acc_ref, *, batch):
    """Pass 2 (lifted only): hinge = relu(log(rn_i + rn_j) + d_ij) over positive
    pairs; distances recomputed per tile (cheaper than storing the (B,B) map)."""
    qi = pl.program_id(0)
    ki = pl.program_id(1)

    @pl.when(jnp.logical_and(qi == 0, ki == 0))
    def _init():
        acc_ref[...] = jnp.zeros_like(acc_ref)

    tq = fq_ref.shape[0]
    tk = fk_ref.shape[0]
    d = _pairwise_tile_dist(fq_ref[...], fk_ref[...])             # (TQ, TK)

    same = lq_ref[...] == jnp.transpose(lk_ref[...])
    qrow = qi * tq + lax.broadcasted_iota(jnp.int32, (tq, 1), 0)
    krow = ki * tk + lax.broadcasted_iota(jnp.int32, (1, tk), 1)
    valid = jnp.logical_and(qrow < batch, krow < batch)
    pos = jnp.logical_and(jnp.logical_and(same, qrow != krow), valid)

    lane = lax.broadcasted_iota(jnp.int32, (1, 128), 1)
    rn_q = jnp.sum(jnp.where(lane == 2, sq_ref[...], 0.0),
                   axis=-1, keepdims=True)                        # (TQ, 1)
    rn_k = jnp.transpose(jnp.sum(jnp.where(lane == 2, sk_ref[...], 0.0),
                                 axis=-1, keepdims=True))         # (1, TK)

    hinge = jnp.maximum(jnp.log(rn_q + rn_k + _EPS) + d, 0.0)
    contrib = jnp.sum(jnp.where(pos, hinge * hinge, 0.0))
    npos = jnp.sum(jnp.where(pos, 1.0, 0.0))
    acc_ref[...] += (jnp.where(lane == 0, contrib, 0.0)
                     + jnp.where(lane == 1, npos, 0.0))

    @pl.when(jnp.logical_and(qi == pl.num_programs(0) - 1,
                             ki == pl.num_programs(1) - 1))
    def _finalize():
        acc = acc_ref[...]
        total = jnp.sum(jnp.where(lane == 0, acc, 0.0))
        npos_t = jnp.sum(jnp.where(lane == 1, acc, 0.0))
        out_ref[...] = jnp.where(
            lane == 0, total / (2.0 * jnp.maximum(npos_t, 1.0)), 0.0)


def _metric_losses(feats, labels, want_triplet, want_lifted, tile_rows=None):
    """Returns a dict {_TRIPLET: ..., _LIFTED: ...} for the requested losses."""
    feats = jnp.asarray(feats)
    b, d = feats.shape
    d_pad = _round_up(d, 128)
    x = feats.astype(jnp.bfloat16)
    if d_pad != d:
        x = jnp.pad(x, ((0, 0), (0, d_pad - d)))
    lab = jnp.asarray(labels).astype(jnp.int32).reshape(b, 1)

    t = tile_rows if tile_rows is not None else (b if b <= 256 else 256)
    n_blk = pl.cdiv(b, t)
    vlim = _vmem_limit_bytes()
    # TODO(synk): tile the feature dim as well once (T, D) bf16 tiles no longer
    # fit the per-generation VMEM budget (D in the several-thousands range).

    feat_q_spec = pl.BlockSpec((t, d_pad), lambda qi, ki: (qi, 0))
    feat_k_spec = pl.BlockSpec((t, d_pad), lambda qi, ki: (ki, 0))
    lab_q_spec = pl.BlockSpec((t, 1), lambda qi, ki: (qi, 0))
    lab_k_spec = pl.BlockSpec((t, 1), lambda qi, ki: (ki, 0))

    stats = pl.pallas_call(
        functools.partial(_metric_stats_kernel, batch=b,
                          want_triplet=want_triplet, want_lifted=want_lifted),
        out_shape=jax.ShapeDtypeStruct((n_blk * t, 128), jnp.float32),
        grid=(n_blk, n_blk),
        in_specs=[feat_q_spec, feat_k_spec, lab_q_spec, lab_k_spec],
        out_specs=pl.BlockSpec((t, 128), lambda qi, ki: (qi, 0)),
        scratch_shapes=[pltpu.VMEM((t, 1), jnp.float32)] * 3,
        compiler_params=pltpu.CompilerParams(
            dimension_semantics=("parallel", "arbitrary"),
            vmem_limit_bytes=vlim),
    )(x, x, lab, lab)

    out = {}
    if want_triplet:
        dp = stats[:b, 0]
        dn = stats[:b, 1]
        ok = jnp.isfinite(dp) & jnp.isfinite(dn)   # anchors with >=1 pos & neg
        per = jnp.where(ok, jnp.maximum(dp - dn + TRIPLET_MARGIN, 0.0), 0.0)
        out[_TRIPLET] = jnp.sum(per) / b
    if want_lifted:
        lifted_row = pl.pallas_call(
            functools.partial(_metric_lifted_kernel, batch=b),
            out_shape=jax.ShapeDtypeStruct((1, 128), jnp.float32),
            grid=(n_blk, n_blk),
            in_specs=[feat_q_spec, feat_k_spec, lab_q_spec, lab_k_spec,
                      pl.BlockSpec((t, 128), lambda qi, ki: (qi, 0)),
                      pl.BlockSpec((t, 128), lambda qi, ki: (ki, 0))],
            out_specs=pl.BlockSpec((1, 128), lambda qi, ki: (0, 0)),
            scratch_shapes=[pltpu.VMEM((1, 128), jnp.float32)],
            compiler_params=pltpu.CompilerParams(
                dimension_semantics=("arbitrary", "arbitrary"),
                vmem_limit_bytes=vlim),
        )(x, x, lab, lab, stats, stats)
        out[_LIFTED] = lifted_row[0, 0]
    return out


# ----------------------------------------------------------------------------
# Per-loss convenience wrappers (torchcv Loss.func_list equivalents)
# ----------------------------------------------------------------------------
def _static_scalar(v):
    """'type'/'weight'/'lam' are configuration: Python numbers keep the forward
    sync-free.  Tensor-typed values are accepted for API compatibility (one
    blocking read)."""
    if isinstance(v, (int, float)):
        return float(v)
    return float(jnp.asarray(v, jnp.float32).mean())


def ce_loss(logits, labels):
    return _ce_family_losses(logits, labels, None, None, None, 0.0, 0.0,
                             losses=frozenset((_CE,)))[_CE_LANE[_CE]]


def kl_loss(logits, target_probs):
    return _ce_family_losses(logits, None, None, target_probs, None, 0.0, 0.0,
                             losses=frozenset((_KL,)))[_CE_LANE[_KL]]


def soft_ce_loss(logits, soft_targets):
    return _ce_family_losses(logits, None, None, soft_targets, None, 0.0, 0.0,
                             losses=frozenset((_SOFT_CE,)))[_CE_LANE[_SOFT_CE]]


def mixup_ce_loss(logits, labels_a, labels_b, lam):
    return _ce_family_losses(logits, labels_a, labels_b, None, None,
                             _static_scalar(lam), 0.0,
                             losses=frozenset((_MIXUP_CE,)))[_CE_LANE[_MIXUP_CE]]


def mixup_soft_ce_loss(logits, tgt_a, tgt_b, lam):
    return _ce_family_losses(logits, None, None, tgt_a, tgt_b, 0.0,
                             _static_scalar(lam),
                             losses=frozenset((_MIXUP_SOFT_CE,))
                             )[_CE_LANE[_MIXUP_SOFT_CE]]


def hard_triplet_loss(feats, labels):
    return _metric_losses(feats, labels, True, False)[_TRIPLET]


def lifted_structure_loss(feats, labels):
    return _metric_losses(feats, labels, False, True)[_LIFTED]


FUNC_LIST = [ce_loss, kl_loss, hard_triplet_loss, lifted_structure_loss,
             soft_ce_loss, mixup_ce_loss, mixup_soft_ce_loss]


# ----------------------------------------------------------------------------
# Dispatch (torchcv Loss.forward equivalent) — static, sync-free, fused
# ----------------------------------------------------------------------------
class _CEGroup:
    """CE-family entries sharing the same logits tensor -> one specialized call."""

    def __init__(self, logits):
        self.logits = logits
        self.labels_a = None
        self.labels_b = None
        self.tgt_a = None
        self.tgt_b = None
        self.lam_ce = 0.0
        self.lam_soft = 0.0
        self.members = {}            # loss type -> dict key

    @staticmethod
    def _fits(cur, new):
        return cur is None or cur is new

    def try_add(self, key, loss_type, params):
        if loss_type in self.members:
            return False
        if loss_type == _CE:
            if not self._fits(self.labels_a, params[1]):
                return False
            self.labels_a = params[1]
        elif loss_type in (_KL, _SOFT_CE):
            if not self._fits(self.tgt_a, params[1]):
                return False
            self.tgt_a = params[1]
        elif loss_type == _MIXUP_CE:
            la, lb, lam = params[1], params[2], params[3]
            if not (self._fits(self.labels_a, la) and self._fits(self.labels_b, lb)):
                return False
            self.labels_a, self.labels_b, self.lam_ce = la, lb, lam
        elif loss_type == _MIXUP_SOFT_CE:
            ta, tb, lam = params[1], params[2], params[3]
            if not (self._fits(self.tgt_a, ta) and self._fits(self.tgt_b, tb)):
                return False
            self.tgt_a, self.tgt_b, self.lam_soft = ta, tb, lam
        self.members[loss_type] = key
        return True


def loss_forward(loss_dict):
    """JAX equivalent of torchcv Loss.forward: dict dispatch + weighted sum.
    Entries sharing inputs are fused; only the requested losses' streams and
    compute are issued."""
    weights = {}
    ce_groups = []
    metric_groups = []

    for key, item in loss_dict.items():
        loss_type = int(_static_scalar(item['type']))
        weights[key] = _static_scalar(item['weight'])
        params = item['params']
        if loss_type in _CE_FAMILY:
            for grp in ce_groups:
                if grp.logits is params[0] and grp.try_add(key, loss_type, params):
                    break
            else:
                grp = _CEGroup(params[0])
                if not grp.try_add(key, loss_type, params):
                    raise ValueError(f'cannot register loss type {loss_type}')
                ce_groups.append(grp)
        elif loss_type in (_TRIPLET, _LIFTED):
            for grp in metric_groups:
                if (grp['feats'] is params[0] and grp['labels'] is params[1]
                        and loss_type not in grp['members']):
                    grp['members'][loss_type] = key
                    break
            else:
                metric_groups.append({'feats': params[0], 'labels': params[1],
                                      'members': {loss_type: key}})
        else:
            raise ValueError(f'unknown loss type {loss_type}')

    out_dict = {}
    for grp in ce_groups:
        row = _ce_family_losses(grp.logits, grp.labels_a, grp.labels_b,
                                grp.tgt_a, grp.tgt_b, grp.lam_ce, grp.lam_soft,
                                losses=frozenset(grp.members.keys()))
        for loss_type, key in grp.members.items():
            out_dict[key] = row[_CE_LANE[loss_type]]
    for grp in metric_groups:
        vals = _metric_losses(grp['feats'], grp['labels'],
                              want_triplet=_TRIPLET in grp['members'],
                              want_lifted=_LIFTED in grp['members'])
        for loss_type, key in grp['members'].items():
            out_dict[key] = vals[loss_type]

    loss = 0.0
    for key in out_dict:
        loss = loss + out_dict[key] * weights[key]
    out_dict['loss'] = loss
    return out_dict


# ----------------------------------------------------------------------------
if __name__ == "__main__":
    key = jax.random.PRNGKey(0)
    k1, k2, k3, k4, k5, k6, k7, k8 = jax.random.split(key, 8)

    # ---------------- main test: fully-fused dispatch ----------------
    B, C, D = 8, 32, 32
    logits = jax.random.normal(k1, (B, C), dtype=jnp.float32)
    hard_labels = (jnp.arange(B) % C).astype(jnp.int32)
    labels_b = ((jnp.arange(B) + 3) % C).astype(jnp.int32)
    soft_targets = jax.nn.softmax(jax.random.normal(k2, (B, C)), axis=-1)
    soft_targets_b = jax.nn.softmax(jax.random.normal(k3, (B, C)), axis=-1)
    feats = jax.random.normal(k4, (B, D), dtype=jnp.float32)
    metric_labels = (jnp.arange(B) // 4).astype(jnp.int32)   # 2 classes of 4
    lam_ce, lam_soft = 0.7, 0.3

    loss_dict = {
        'ce_loss':            {'type': 0, 'weight': 1.0,
                               'params': (logits, hard_labels)},
        'kl_loss':            {'type': 1, 'weight': 0.5,
                               'params': (logits, soft_targets)},
        'triplet_loss':       {'type': 2, 'weight': 1.0,
                               'params': (feats, metric_labels)},
        'lifted_loss':        {'type': 3, 'weight': 0.25,
                               'params': (feats, metric_labels)},
        'soft_ce_loss':       {'type': 4, 'weight': 1.0,
                               'params': (logits, soft_targets)},
        'mixup_ce_loss':      {'type': 5, 'weight': 0.5,
                               'params': (logits, hard_labels, labels_b, lam_ce)},
        'mixup_soft_ce_loss': {'type': 6, 'weight': 0.5,
                               'params': (logits, soft_targets, soft_targets_b,
                                          lam_soft)},
    }

    out = loss_forward(loss_dict)
    jax.block_until_ready(out['loss'])

    # pure-JAX f32 reference
    logp = jax.nn.log_softmax(logits, axis=-1)
    ce_ref = -jnp.mean(jnp.take_along_axis(logp, hard_labels[:, None], axis=-1))
    ce_b_ref = -jnp.mean(jnp.take_along_axis(logp, labels_b[:, None], axis=-1))
    kl_ref = jnp.mean(jnp.sum(
        soft_targets * (jnp.log(soft_targets + _EPS) - logp), axis=-1))
    sce_ref = -jnp.mean(jnp.sum(soft_targets * logp, axis=-1))
    sce_b_ref = -jnp.mean(jnp.sum(soft_targets_b * logp, axis=-1))
    mix_ce_ref = lam_ce * ce_ref + (1.0 - lam_ce) * ce_b_ref
    mix_sf_ref = lam_soft * sce_ref + (1.0 - lam_soft) * sce_b_ref

    def _metric_refs(f, labs, n):
        g = f @ f.T
        sq = jnp.sum(f * f, axis=-1, keepdims=True)
        dmat = jnp.sqrt(jnp.maximum(sq + sq.T - 2.0 * g, 0.0) + _EPS)
        same = labs[:, None] == labs[None, :]
        pos = same & ~jnp.eye(n, dtype=bool)
        dp = jnp.max(jnp.where(pos, dmat, -jnp.inf), axis=-1)
        dn = jnp.min(jnp.where(~same, dmat, jnp.inf), axis=-1)
        ok = jnp.isfinite(dp) & jnp.isfinite(dn)
        trip = jnp.sum(jnp.where(ok, jnp.maximum(dp - dn + TRIPLET_MARGIN, 0.0),
                                 0.0)) / n
        rn = jnp.sum(jnp.where(~same, jnp.exp(LIFTED_MARGIN - dmat), 0.0),
                     axis=-1, keepdims=True)
        hinge = jnp.maximum(jnp.log(rn + rn.T + _EPS) + dmat, 0.0)
        npos = jnp.sum(pos.astype(jnp.float32))
        lift = jnp.sum(jnp.where(pos, hinge * hinge, 0.0)) / (
            2.0 * jnp.maximum(npos, 1.0))
        return trip, lift

    trip_ref, lift_ref = _metric_refs(feats, metric_labels, B)

    refs = {'ce_loss': ce_ref, 'kl_loss': kl_ref, 'triplet_loss': trip_ref,
            'lifted_loss': lift_ref, 'soft_ce_loss': sce_ref,
            'mixup_ce_loss': mix_ce_ref, 'mixup_soft_ce_loss': mix_sf_ref}
    total_ref = sum(float(refs[k]) * loss_dict[k]['weight'] for k in refs)

    for k, r in refs.items():
        assert jnp.allclose(out[k], r, rtol=2e-2, atol=5e-3), (
            k, float(out[k]), float(r))
    assert jnp.allclose(out['loss'], total_ref, rtol=2e-2, atol=5e-3), (
        float(out['loss']), total_ref)
    assert bool(jnp.isfinite(out['loss'])), "non-finite total loss"

    # ------- second test: multi-tile / dual-split / specialized paths -------
    B2, C2, D2 = 39, 200, 96            # ragged batch, non-128 class dim
    logits2 = jax.random.normal(k5, (B2, C2), dtype=jnp.float32)
    labels2 = ((jnp.arange(B2) * 7) % C2).astype(jnp.int32)
    tgt2 = jax.nn.softmax(jax.random.normal(k6, (B2, C2)), axis=-1)
    feats2 = jax.random.normal(k7, (B2, D2), dtype=jnp.float32)
    mlab2 = jnp.concatenate([jnp.arange(B2 - 1) % 5,
                             jnp.array([97])]).astype(jnp.int32)  # 1 singleton

    ce2 = _ce_family_losses(logits2, labels2, None, None, None, 0.0, 0.0,
                            losses=frozenset((_CE,)),
                            tile_rows=8)[_CE_LANE[_CE]]
    sce2 = _ce_family_losses(logits2, None, None, tgt2, None, 0.0, 0.0,
                             losses=frozenset((_SOFT_CE,)),
                             tile_rows=8)[_CE_LANE[_SOFT_CE]]
    met2 = _metric_losses(feats2, mlab2, True, True, tile_rows=16)
    jax.block_until_ready(met2[_LIFTED])

    logp2 = jax.nn.log_softmax(logits2, axis=-1)
    ce2_ref = -jnp.mean(jnp.take_along_axis(logp2, labels2[:, None], axis=-1))
    sce2_ref = -jnp.mean(jnp.sum(tgt2 * logp2, axis=-1))
    trip2_ref, lift2_ref = _metric_refs(feats2, mlab2, B2)

    assert jnp.allclose(ce2, ce2_ref, rtol=2e-2, atol=5e-3), (
        float(ce2), float(ce2_ref))
    assert jnp.allclose(sce2, sce2_ref, rtol=2e-2, atol=5e-3), (
        float(sce2), float(sce2_ref))
    assert jnp.allclose(met2[_TRIPLET], trip2_ref, rtol=2e-2, atol=5e-3), (
        float(met2[_TRIPLET]), float(trip2_ref))
    assert jnp.allclose(met2[_LIFTED], lift2_ref, rtol=2e-2, atol=5e-3), (
        float(met2[_LIFTED]), float(lift2_ref))

    print("KERNEL_OK")
</pallas_src>

<mosaic_0001>
module attributes {stable_mosaic.version = 11 : i64} {
  func.func @_ce_family_kernel(%arg0: i32, %arg1: i32, %arg2: memref<8x128xbf16, #tpu.memory_space<vmem>>, %arg3: memref<8x1xi32, #tpu.memory_space<vmem>>, %arg4: memref<8x1xi32, #tpu.memory_space<vmem>>, %arg5: memref<8x128xbf16, #tpu.memory_space<vmem>>, %arg6: memref<8x128xbf16, #tpu.memory_space<vmem>>, %arg7: memref<1x8x128xf32, #tpu.memory_space<vmem>>, %arg8: memref<1x128xf32, #tpu.memory_space<vmem>>) attributes {dimension_semantics = [#tpu.dimension_semantics<parallel>, #tpu.dimension_semantics<arbitrary>], iteration_bounds = array<i64: 1, 1>, scalar_prefetch = 0 : i64, scratch_operands = 1 : i64, tpu.core_type = #tpu.core_type<tc>, window_params = [{transform_indices = @transform_0, window_bounds = array<i64: 8, 128>}, {transform_indices = @transform_1, window_bounds = array<i64: 8, 1>}, {transform_indices = @transform_2, window_bounds = array<i64: 8, 1>}, {transform_indices = @transform_3, window_bounds = array<i64: 8, 128>}, {transform_indices = @transform_4, window_bounds = array<i64: 8, 128>}, {transform_indices = @transform_5, window_bounds = array<i64: 1, 8, 128>}]} {
    %c0_i32 = arith.constant 0 : i32
    %0 = arith.cmpi eq, %arg1, %c0_i32 : i32
    %1 = arith.extui %0 : i1 to i32
    %c0_i32_0 = arith.constant 0 : i32
    %2 = arith.cmpi ne, %1, %c0_i32_0 : i32
    scf.if %2 {
      %cst_44 = arith.constant 0.000000e+00 : f32
      %132 = vector.broadcast %cst_44 : f32 to vector<1x128xf32>
      %c0_45 = arith.constant 0 : index
      %c0_46 = arith.constant 0 : index
      %133 = vector.load %arg8[%c0_45, %c0_46] : memref<1x128xf32, #tpu.memory_space<vmem>>, vector<1x128xf32>
      tpu.vector_store %arg8[%c0_45, %c0_46], %132 {strides = array<i32>} : memref<1x128xf32, #tpu.memory_space<vmem>>, vector<1x128xf32>,
    } else {
    }
    %c0 = arith.constant 0 : index
    %c0_1 = arith.constant 0 : index
    %3 = vector.load %arg2[%c0, %c0_1] : memref<8x128xbf16, #tpu.memory_space<vmem>>, vector<8x128xbf16>
    %4 = arith.extf %3 : vector<8x128xbf16> to vector<8x128xf32>
    %c1_i32 = arith.constant 1 : i32
    %5 = arith.muli %arg0, %c1_i32 : i32
    %6 = arith.addi %5, %arg1 : i32
    %c8_i32 = arith.constant 8 : i32
    %7 = arith.muli %6, %c8_i32 : i32
    %8 = tpu.iota {dimensions = array<i32: 0>} : vector<8x1xi32>
    %9 = vector.broadcast %7 : i32 to vector<8x1xi32>
    %10 = arith.addi %9, %8 : vector<8x1xi32>
    %c8_i32_2 = arith.constant 8 : i32
    %11 = vector.broadcast %c8_i32_2 : i32 to vector<8x1xi32>
    %12 = arith.cmpi slt, %10, %11 : vector<8x1xi32>
    %cst = arith.constant dense<0xFF800000> : vector<8xf32>
    %13 = vector.multi_reduction <maximumf>, %4, %cst [1] : vector<8x128xf32> to vector<8xf32>
    %14 = vector.shape_cast %13 : vector<8xf32> to vector<8x1xf32>
    %15 = vector.broadcast %14 : vector<8x1xf32> to vector<8x128xf32>
    %16 = arith.subf %4, %15 : vector<8x128xf32>
    %17 = math.exp %16 : vector<8x128xf32>
    %cst_3 = arith.constant dense<0.000000e+00> : vector<8xf32>
    %18 = vector.multi_reduction <add>, %17, %cst_3 [1] : vector<8x128xf32> to vector<8xf32>
    %19 = vector.shape_cast %18 : vector<8xf32> to vector<8x1xf32>
    %20 = math.log %19 : vector<8x1xf32>
    %21 = vector.broadcast %20 : vector<8x1xf32> to vector<8x128xf32>
    %22 = arith.subf %16, %21 : vector<8x128xf32>
    %23 = tpu.iota {dimensions = array<i32: 1>} : vector<8x128xi32>
    %c0_4 = arith.constant 0 : index
    %c0_5 = arith.constant 0 : index
    %24 = vector.load %arg3[%c0_4, %c0_5] : memref<8x1xi32, #tpu.memory_space<vmem>>, vector<8x1xi32>
    %25 = vector.broadcast %24 : vector<8x1xi32> to vector<8x128xi32>
    %26 = arith.cmpi eq, %23, %25 : vector<8x128xi32>
    %cst_6 = arith.constant 0.000000e+00 : f32
    %27 = vector.broadcast %cst_6 : f32 to vector<8x128xf32>
    %28 = arith.select %26, %22, %27 : vector<8x128xi1>, vector<8x128xf32>
    %cst_7 = arith.constant dense<0.000000e+00> : vector<8xf32>
    %29 = vector.multi_reduction <add>, %28, %cst_7 [1] : vector<8x128xf32> to vector<8xf32>
    %30 = vector.shape_cast %29 : vector<8xf32> to vector<8x1xf32>
    %cst_8 = arith.constant 0.000000e+00 : f32
    %31 = vector.broadcast %cst_8 : f32 to vector<8x1xf32>
    %32 = arith.subf %31, %30 : vector<8x1xf32>
    %c0_9 = arith.constant 0 : index
    %c0_10 = arith.constant 0 : index
    %33 = vector.load %arg4[%c0_9, %c0_10] : memref<8x1xi32, #tpu.memory_space<vmem>>, vector<8x1xi32>
    %34 = vector.broadcast %33 : vector<8x1xi32> to vector<8x128xi32>
    %35 = arith.cmpi eq, %23, %34 : vector<8x128xi32>
    %cst_11 = arith.constant 0.000000e+00 : f32
    %36 = vector.broadcast %cst_11 : f32 to vector<8x128xf32>
    %37 = arith.select %35, %22, %36 : vector<8x128xi1>, vector<8x128xf32>
    %cst_12 = arith.constant dense<0.000000e+00> : vector<8xf32>
    %38 = vector.multi_reduction <add>, %37, %cst_12 [1] : vector<8x128xf32> to vector<8xf32>
    %39 = vector.shape_cast %38 : vector<8xf32> to vector<8x1xf32>
    %cst_13 = arith.constant 0.000000e+00 : f32
    %40 = vector.broadcast %cst_13 : f32 to vector<8x1xf32>
    %41 = arith.subf %40, %39 : vector<8x1xf32>
    %c0_14 = arith.constant 0 : index
    %c0_15 = arith.constant 0 : index
    %42 = vector.load %arg5[%c0_14, %c0_15] : memref<8x128xbf16, #tpu.memory_space<vmem>>, vector<8x128xbf16>
    %43 = arith.extf %42 : vector<8x128xbf16> to vector<8x128xf32>
    %44 = arith.mulf %43, %22 : vector<8x128xf32>
    %cst_16 = arith.constant dense<0.000000e+00> : vector<8xf32>
    %45 = vector.multi_reduction <add>, %44, %cst_16 [1] : vector<8x128xf32> to vector<8xf32>
    %46 = vector.shape_cast %45 : vector<8xf32> to vector<8x1xf32>
    %cst_17 = arith.constant 0.000000e+00 : f32
    %47 = vector.broadcast %cst_17 : f32 to vector<8x1xf32>
    %48 = arith.subf %47, %46 : vector<8x1xf32>
    %c0_18 = arith.constant 0 : index
    %c0_19 = arith.constant 0 : index
    %49 = vector.load %arg6[%c0_18, %c0_19] : memref<8x128xbf16, #tpu.memory_space<vmem>>, vector<8x128xbf16>
    %50 = arith.extf %49 : vector<8x128xbf16> to vector<8x128xf32>
    %51 = arith.mulf %50, %22 : vector<8x128xf32>
    %cst_20 = arith.constant dense<0.000000e+00> : vector<8xf32>
    %52 = vector.multi_reduction <add>, %51, %cst_20 [1] : vector<8x128xf32> to vector<8xf32>
    %53 = vector.shape_cast %52 : vector<8xf32> to vector<8x1xf32>
    %cst_21 = arith.constant 0.000000e+00 : f32
    %54 = vector.broadcast %cst_21 : f32 to vector<8x1xf32>
    %55 = arith.subf %54, %53 : vector<8x1xf32>
    %cst_22 = arith.constant 9.99999996E-13 : f32
    %56 = vector.broadcast %cst_22 : f32 to vector<8x128xf32>
    %57 = arith.addf %43, %56 : vector<8x128xf32>
    %58 = math.log %57 : vector<8x128xf32>
    %59 = arith.mulf %43, %58 : vector<8x128xf32>
    %cst_23 = arith.constant dense<0.000000e+00> : vector<8xf32>
    %60 = vector.multi_reduction <add>, %59, %cst_23 [1] : vector<8x128xf32> to vector<8xf32>
    %61 = vector.shape_cast %60 : vector<8xf32> to vector<8x1xf32>
    %62 = arith.addf %61, %48 : vector<8x1xf32>
    %cst_24 = arith.constant 0.699999988 : f32
    %63 = vector.broadcast %cst_24 : f32 to vector<8x1xf32>
    %64 = arith.mulf %63, %32 : vector<8x1xf32>
    %cst_25 = arith.constant 3.000000e-01 : f32
    %65 = vector.broadcast %cst_25 : f32 to vector<8x1xf32>
    %66 = arith.mulf %65, %41 : vector<8x1xf32>
    %67 = arith.addf %64, %66 : vector<8x1xf32>
    %cst_26 = arith.constant 3.000000e-01 : f32
    %68 = vector.broadcast %cst_26 : f32 to vector<8x1xf32>
    %69 = arith.mulf %68, %48 : vector<8x1xf32>
    %cst_27 = arith.constant 0.699999988 : f32
    %70 = vector.broadcast %cst_27 : f32 to vector<8x1xf32>
    %71 = arith.mulf %70, %55 : vector<8x1xf32>
    %72 = arith.addf %69, %71 : vector<8x1xf32>
    %73 = tpu.iota {dimensions = array<i32: 1>} : vector<1x128xi32>
    %cst_28 = arith.constant 0.000000e+00 : f32
    %74 = vector.broadcast %cst_28 : f32 to vector<8x128xf32>
    %c0_i32_29 = arith.constant 0 : i32
    %75 = vector.broadcast %c0_i32_29 : i32 to vector<1x128xi32>
    %76 = arith.cmpi eq, %73, %75 : vector<1x128xi32>
    %cst_30 = arith.constant 0.000000e+00 : f32
    %77 = vector.shape_cast %76 : vector<1x128xi1> to vector<1x128xi1>
    %78 = vector.broadcast %77 : vector<1x128xi1> to vector<8x128xi1>
    %79 = vector.shape_cast %32 : vector<8x1xf32> to vector<8x1xf32>
    %80 = vector.broadcast %79 : vector<8x1xf32> to vector<8x128xf32>
    %81 = vector.broadcast %cst_30 : f32 to vector<8x128xf32>
    %82 = arith.select %78, %80, %81 : vector<8x128xi1>, vector<8x128xf32>
    %83 = arith.addf %74, %82 : vector<8x128xf32>
    %c1_i32_31 = arith.constant 1 : i32
    %84 = vector.broadcast %c1_i32_31 : i32 to vector<1x128xi32>
    %85 = arith.cmpi eq, %73, %84 : vector<1x128xi32>
    %cst_32 = arith.constant 0.000000e+00 : f32
    %86 = vector.shape_cast %85 : vector<1x128xi1> to vector<1x128xi1>
    %87 = vector.broadcast %86 : vector<1x128xi1> to vector<8x128xi1>
    %88 = vector.shape_cast %62 : vector<8x1xf32> to vector<8x1xf32>
    %89 = vector.broadcast %88 : vector<8x1xf32> to vector<8x128xf32>
    %90 = vector.broadcast %cst_32 : f32 to vector<8x128xf32>
    %91 = arith.select %87, %89, %90 : vector<8x128xi1>, vector<8x128xf32>
    %92 = arith.addf %83, %91 : vector<8x128xf32>
    %c2_i32 = arith.constant 2 : i32
    %93 = vector.broadcast %c2_i32 : i32 to vector<1x128xi32>
    %94 = arith.cmpi eq, %73, %93 : vector<1x128xi32>
    %cst_33 = arith.constant 0.000000e+00 : f32
    %95 = vector.shape_cast %94 : vector<1x128xi1> to vector<1x128xi1>
    %96 = vector.broadcast %95 : vector<1x128xi1> to vector<8x128xi1>
    %97 = vector.shape_cast %48 : vector<8x1xf32> to vector<8x1xf32>
    %98 = vector.broadcast %97 : vector<8x1xf32> to vector<8x128xf32>
    %99 = vector.broadcast %cst_33 : f32 to vector<8x128xf32>
    %100 = arith.select %96, %98, %99 : vector<8x128xi1>, vector<8x128xf32>
    %101 = arith.addf %92, %100 : vector<8x128xf32>
    %c3_i32 = arith.constant 3 : i32
    %102 = vector.broadcast %c3_i32 : i32 to vector<1x128xi32>
    %103 = arith.cmpi eq, %73, %102 : vector<1x128xi32>
    %cst_34 = arith.constant 0.000000e+00 : f32
    %104 = vector.shape_cast %103 : vector<1x128xi1> to vector<1x128xi1>
    %105 = vector.broadcast %104 : vector<1x128xi1> to vector<8x128xi1>
    %106 = vector.shape_cast %67 : vector<8x1xf32> to vector<8x1xf32>
    %107 = vector.broadcast %106 : vector<8x1xf32> to vector<8x128xf32>
    %108 = vector.broadcast %cst_34 : f32 to vector<8x128xf32>
    %109 = arith.select %105, %107, %108 : vector<8x128xi1>, vector<8x128xf32>
    %110 = arith.addf %101, %109 : vector<8x128xf32>
    %c4_i32 = arith.constant 4 : i32
    %111 = vector.broadcast %c4_i32 : i32 to vector<1x128xi32>
    %112 = arith.cmpi eq, %73, %111 : vector<1x128xi32>
    %cst_35 = arith.constant 0.000000e+00 : f32
    %113 = vector.shape_cast %112 : vector<1x128xi1> to vector<1x128xi1>
    %114 = vector.broadcast %113 : vector<1x128xi1> to vector<8x128xi1>
    %115 = vector.shape_cast %72 : vector<8x1xf32> to vector<8x1xf32>
    %116 = vector.broadcast %115 : vector<8x1xf32> to vector<8x128xf32>
    %117 = vector.broadcast %cst_35 : f32 to vector<8x128xf32>
    %118 = arith.select %114, %116, %117 : vector<8x128xi1>, vector<8x128xf32>
    %119 = arith.addf %110, %118 : vector<8x128xf32>
    %cst_36 = arith.constant 0.000000e+00 : f32
    %120 = vector.shape_cast %12 : vector<8x1xi1> to vector<8x1xi1>
    %121 = vector.broadcast %120 : vector<8x1xi1> to vector<8x128xi1>
    %122 = vector.broadcast %cst_36 : f32 to vector<8x128xf32>
    %123 = arith.select %121, %119, %122 : vector<8x128xi1>, vector<8x128xf32>
    %c0_37 = arith.constant 0 : index
    %c0_38 = arith.constant 0 : index
    %124 = vector.load %arg8[%c0_37, %c0_38] : memref<1x128xf32, #tpu.memory_space<vmem>>, vector<1x128xf32>
    %cst_39 = arith.constant dense<0.000000e+00> : vector<128xf32>
    %125 = vector.multi_reduction <add>, %123, %cst_39 [0] : vector<8x128xf32> to vector<128xf32>
    %126 = vector.shape_cast %125 : vector<128xf32> to vector<1x128xf32>
    %127 = arith.addf %124, %126 : vector<1x128xf32>
    %c0_40 = arith.constant 0 : index
    %c0_41 = arith.constant 0 : index
    %128 = vector.load %arg8[%c0_40, %c0_41] : memref<1x128xf32, #tpu.memory_space<vmem>>, vector<1x128xf32>
    tpu.vector_store %arg8[%c0_40, %c0_41], %127 {strides = array<i32>} : memref<1x128xf32, #tpu.memory_space<vmem>>, vector<1x128xf32>,
    %c0_i32_42 = arith.constant 0 : i32
    %129 = arith.cmpi eq, %arg1, %c0_i32_42 : i32
    %130 = arith.extui %129 : i1 to i32
    %c0_i32_43 = arith.constant 0 : i32
    %131 = arith.cmpi ne, %130, %c0_i32_43 : i32
    scf.if %131 {
      %c0_44 = arith.constant 0 : index
      %c0_45 = arith.constant 0 : index
      %132 = vector.load %arg8[%c0_44, %c0_45] : memref<1x128xf32, #tpu.memory_space<vmem>>, vector<1x128xf32>
      %cst_46 = arith.constant 1.250000e-01 : f32
      %133 = vector.broadcast %cst_46 : f32 to vector<1x128xf32>
      %134 = arith.mulf %132, %133 : vector<1x128xf32>
      %135 = vector.shape_cast %134 : vector<1x128xf32> to vector<1x1x128xf32>
      %136 = vector.broadcast %135 : vector<1x1x128xf32> to vector<1x8x128xf32>
      %c0_47 = arith.constant 0 : index
      %c0_48 = arith.constant 0 : index
      %c0_49 = arith.constant 0 : index
      %137 = vector.load %arg7[%c0_47, %c0_48, %c0_49] : memref<1x8x128xf32, #tpu.memory_space<vmem>>, vector<1x8x128xf32>
      tpu.vector_store %arg7[%c0_47, %c0_48, %c0_49], %136 {strides = array<i32>} : memref<1x8x128xf32, #tpu.memory_space<vmem>>, vector<1x8x128xf32>,
    } else {
    }
    return
  }
  func.func @transform_0(%arg0: i32, %arg1: i32) -> (i32, i32) {
    %c1_i32 = arith.constant 1 : i32
    %0 = arith.muli %arg0, %c1_i32 : i32
    %1 = arith.addi %0, %arg1 : i32
    %c0_i32 = arith.constant 0 : i32
    %2 = arith.minsi %1, %c0_i32 : i32
    %c0_i32_0 = arith.constant 0 : i32
    %c0_i32_1 = arith.constant 0 : i32
    return %2, %c0_i32_0 : i32, i32
  }
  func.func @transform_1(%arg0: i32, %arg1: i32) -> (i32, i32) {
    %c1_i32 = arith.constant 1 : i32
    %0 = arith.muli %arg0, %c1_i32 : i32
    %1 = arith.addi %0, %arg1 : i32
    %c0_i32 = arith.constant 0 : i32
    %2 = arith.minsi %1, %c0_i32 : i32
    %c0_i32_0 = arith.constant 0 : i32
    %c0_i32_1 = arith.constant 0 : i32
    return %2, %c0_i32_0 : i32, i32
  }
  func.func @transform_2(%arg0: i32, %arg1: i32) -> (i32, i32) {
    %c1_i32 = arith.constant 1 : i32
    %0 = arith.muli %arg0, %c1_i32 : i32
    %1 = arith.addi %0, %arg1 : i32
    %c0_i32 = arith.constant 0 : i32
    %2 = arith.minsi %1, %c0_i32 : i32
    %c0_i32_0 = arith.constant 0 : i32
    %c0_i32_1 = arith.constant 0 : i32
    return %2, %c0_i32_0 : i32, i32
  }
  func.func @transform_3(%arg0: i32, %arg1: i32) -> (i32, i32) {
    %c1_i32 = arith.constant 1 : i32
    %0 = arith.muli %arg0, %c1_i32 : i32
    %1 = arith.addi %0, %arg1 : i32
    %c0_i32 = arith.constant 0 : i32
    %2 = arith.minsi %1, %c0_i32 : i32
    %c0_i32_0 = arith.constant 0 : i32
    %c0_i32_1 = arith.constant 0 : i32
    return %2, %c0_i32_0 : i32, i32
  }
  func.func @transform_4(%arg0: i32, %arg1: i32) -> (i32, i32) {
    %c1_i32 = arith.constant 1 : i32
    %0 = arith.muli %arg0, %c1_i32 : i32
    %1 = arith.addi %0, %arg1 : i32
    %c0_i32 = arith.constant 0 : i32
    %2 = arith.minsi %1, %c0_i32 : i32
    %c0_i32_0 = arith.constant 0 : i32
    %c0_i32_1 = arith.constant 0 : i32
    return %2, %c0_i32_0 : i32, i32
  }
  func.func @transform_5(%arg0: i32, %arg1: i32) -> (i32, i32, i32) {
    %c0_i32 = arith.constant 0 : i32
    %c0_i32_0 = arith.constant 0 : i32
    %c0_i32_1 = arith.constant 0 : i32
    return %arg0, %c0_i32, %c0_i32_0 : i32, i32, i32
  }
}

</mosaic_0001>

<bundles_post_ra>
// kernel: tpu_custom_call.1
= control target key start
LH: loop header
LB: loop body
LE: loop exit
PB: predicated region body
PF: predicated region fallthrough
CT: control target
= control target key end

     0   :  { %s405_s0 = inlined_call_operand.vmem [shape: bf16[8,128], index: 0, kind: input, shape index: {}]   ;;  %s406_s1 = inlined_call_operand.vmem [shape: s32[8,1], index: 1, kind: input, shape index: {}]   ;;  %s407_s2 = inlined_call_operand.vmem [shape: s32[8,1], index: 2, kind: input, shape index: {}]   ;;  %s408_s3 = inlined_call_operand.vmem [shape: bf16[8,128], index: 3, kind: input, shape index: {}]   ;;  %s409_s4 = inlined_call_operand.vmem [shape: bf16[8,128], index: 4, kind: input, shape index: {}]   ;;  %s410_s5 = inlined_call_operand.hbm [shape: f32[1,8,128], index: 5, kind: output, shape index: {}]  }
   0x1   :  { %v161_v0 = vld [vmem:[%s405_s0] sm:$0xf] }
   0x2   :  { %10 = vsyncpa [#allocation4], 0  ;;  %v162_v1 = vunpack.c.l.bf16 %v161_v0  ;;  %v182_v2 = vld [vmem:[%s406_s1] sm:$0xff]  ;;  %v354_v3 = vmov 0   ;;  %v180_v17 = vlaneseq  ;;  %v355_v29 = vmov 0.0   ;;  %s278_s27 = sshll.u32 %s410_s5, 4  ;;  %s279_s27 = int_to_ptr.hbm [resolvable:$true] %s278_s27 }
   0x3   :  { %320 = vset.pattern.permute.xlu1 %v354_v3  ;;  %321 = vset.pattern.permute.xlu0 %v354_v3  ;;  %v191_v4 = vld [vmem:[%s407_s2] sm:$0xff]  ;;  %160 = vst [vmem:[#allocation2] sm:$0x1] %v355_v29 }
   0x4   :  { %170 = vmax.xlane.f32.xlu0 %v162_v1  ;;  %184 = vperm.xlu1 %320, %v182_v2   ;;  %v200_v9 = vld [vmem:[%s408_s3] sm:$0xf]  ;;  %v181_v18 = vand.u32 127, %v180_v17  ;;  %s356_s3 = smov [#allocation3]  }
   0x5   :  { %v201_v10 = vunpack.c.l.bf16 %v200_v9  ;;  %v206_v26 = vld [vmem:[%s409_s4] sm:$0xf]  ;;  %s276_s4 = sshll.u32 %s356_s3, 4  ;;  %s277_s4 = int_to_ptr.vmem [resolvable:$true] %s276_s4 }
   0x6   :  { %v207_v27 = vunpack.c.l.bf16 %v206_v26  ;;  %vm225_vm2 = vcmp.eq.s32.totalorder %v181_v18, 0  ;;  %vm230_vm3 = vcmp.eq.s32.totalorder %v181_v18, 1  ;;  %vm235_vm4 = vcmp.eq.s32.totalorder %v181_v18, 2 }
   0x7   :  { %v212_v11 = vadd.f32 1e-12, %v201_v10  ;;  %vm240_vm5 = vcmp.eq.s32.totalorder %v181_v18, 3  ;;  %vm245_vm6 = vcmp.eq.s32.totalorder %v181_v18, 4 }
   0xa   :  { %v253_v60 = vld [vmem:[#allocation2] sm:$0x1] }
   0xc   :  { %193 = vperm.xlu1 %320, %v191_v4  }
  0x76   :  { %v185_v15 = vpop.permute.xlu1 %184 }
  0x77   :  { %v171_v5 = vpop.xlane.xlu0 %170  ;;  %vm186_vm0 = vcmp.eq.s32.totalorder %v181_v18, %v185_v15 }
  0x78   :  { %v172_v6 = vsub.f32 %v162_v1, %v171_v5 }
  0x7a   :  { %v173_v7 = vmul.f32 1.442695, %v172_v6 }
  0x7c   :  { %322 = vpow2.f32 %v173_v7 }
  0x7d   :  { %324 = vlog2.f32 %v212_v11 }
  0x7e   :  { %v194_v19 = vpop.permute.xlu1 %193 }
  0x7f   :  { %vm195_vm1 = vcmp.eq.s32.totalorder %v181_v18, %v194_v19 }
  0x82   :  { %v323_v8 = vpop.eup %322 }
  0x83   :  { %175 = vadd.xlane.f32.xlu0 %v323_v8  ;;  %v325_v12 = vpop.eup %324 }
  0x84   :  { %v214_v13 = vmul.f32 0.6931472, %v325_v12 }
  0x86   :  { %v215_v14 = vmul.f32 %v214_v13, %v201_v10 }
  0x88   :  { %216 = vadd.xlane.f32.xlu1 %v215_v14 }
  0xf6   :  { %v176_v16 = vpop.xlane.xlu0 %175 }
  0xf7   :  { %326 = vlog2.f32 %v176_v16 }
  0xfb   :  { %v217_v33 = vpop.xlane.xlu1 %216 }
  0xfd   :  { %v327_v20 = vpop.eup %326 }
  0xfe   :  { %v178_v21 = vmul.f32 0.6931472, %v327_v20 }
 0x100   :  { %v179_v22 = vsub.f32 %v172_v6, %v178_v21 }
 0x102   :  { %v196_v23 = vsel %vm195_vm1, %v179_v22, 0.0  ;;  %v187_v24 = vsel %vm186_vm0, %v179_v22, 0.0  ;;  %v202_v25 = vmul.f32 %v201_v10, %v179_v22  ;;  %v208_v28 = vmul.f32 %v207_v27, %v179_v22 }
 0x103   :  { %197 = vadd.xlane.f32.xlu0 %v196_v23  ;;  %188 = vadd.xlane.f32.xlu2 %v187_v24 }
 0x10b   :  { %203 = vadd.xlane.f32.xlu2 %v202_v25 }
 0x113   :  { %209 = vadd.xlane.f32.xlu2 %v208_v28 }
 0x176   :  { %v189_v30 = vpop.xlane.xlu2 %188  ;;  %v198_v31 = vpop.xlane.xlu0 %197 }
 0x177   :  { %v199_v34 = vsub.f32 0.0, %v198_v31  ;;  %v190_v35 = vsub.f32 0.0, %v189_v30 }
 0x179   :  { %v220_v38 = vmul.f32 0.3, %v199_v34  ;;  %v219_v39 = vmul.f32 0.7, %v190_v35  ;;  %v228_v40 = vsel %vm225_vm2, %v190_v35, 0.0 }
 0x17b   :  { %v221_v44 = vadd.f32 %v220_v38, %v219_v39 }
 0x17d   :  { %v243_v50 = vsel %vm240_vm5, %v221_v44, 0.0 }
 0x17e   :  { %v204_v32 = vpop.xlane.xlu2 %203 }
 0x17f   :  { %v205_v36 = vsub.f32 0.0, %v204_v32 }
 0x181   :  { %v218_v37 = vadd.f32 %v217_v33, %v205_v36  ;;  %v238_v45 = vsel %vm235_vm4, %v205_v36, 0.0  ;;  %v222_v48 = vmul.f32 0.3, %v205_v36 }
 0x183   :  { %v233_v41 = vsel %vm230_vm3, %v218_v37, 0.0 }
 0x184   :  { %v234_v42 = vadd.f32 %v233_v41, %v228_v40 }
 0x186   :  { %v210_v43 = vpop.xlane.xlu2 %209  ;;  %v239_v47 = vadd.f32 %v238_v45, %v234_v42 }
 0x187   :  { %v211_v46 = vsub.f32 0.0, %v210_v43 }
 0x188   :  { %v244_v52 = vadd.f32 %v243_v50, %v239_v47 }
 0x189   :  { %v223_v49 = vmul.f32 0.7, %v211_v46 }
 0x18b   :  { %v224_v51 = vadd.f32 %v223_v49, %v222_v48 }
 0x18d   :  { %v248_v53 = vsel %vm245_vm6, %v224_v51, 0.0 }
 0x18e   :  { %v249_v54 = vadd.f32 %v248_v53, %v244_v52 }
 0x190   :  { %v254_v55 = vrot.slane %v249_v54, 4 }
 0x192   :  { %v255_v56 = vadd.f32 %v254_v55, %v249_v54 }
 0x194   :  { %v256_v57 = vrot.slane %v255_v56, 2 }
 0x196   :  { %v257_v58 = vadd.f32 %v256_v57, %v255_v56 }
 0x198   :  { %v258_v59 = vrot.slane %v257_v58, 1 }
 0x19a   :  { %v259_v61 = vadd.f32 %v258_v59, %v257_v58 }
 0x19c   :  { %v260_v62 = vadd.f32 %v259_v61, %v253_v60 }
 0x19e   :  { %261 = vst [vmem:[#allocation2] sm:$0x1] %v260_v62 }
 0x1a5   :  { %v265_v63 = vld [vmem:[#allocation2] sm:$0x1] }
 0x1a6   :  { %v266_v0 = vmul.f32 0.125, %v265_v63 }
 0x1a8   :  { %v268_v1 = vperm.slane %v266_v0, 0 }
 0x1aa   :  { %270 = vst [vmem:[#allocation3] sm:$0xff] %v268_v1 }
 0x1ab   :  { %281 = dma.vmem_to_hbm [thread:$0]  %s277_s4, 128, %s279_s27, [#allocation4]  }
 0x1ac   :  { %352 = dma.done.wait [#allocation4], 128  }
 0x1ad   :  { %353 = vsyncadd [#allocation4], 4294967168 }
 0x1ae   :  { %286 = vsyncpa [#allocation4], 1 }

</bundles_post_ra>
